<compile_context>
chip_gen: v7x
topology: tpu7x:2x2x1
jax: 0.10.0
libtpu: 0.0.40
codegen_flags: <defaults>
</compile_context>

<pallas_src>
import functools

import jax
import jax.numpy as jnp
from jax.experimental import pallas as pl
from jax.experimental.pallas import tpu as pltpu

N_CLASSES = 4
SMOOTH = 1e-5
LANE = 128
SPLIT = 2          # 2-way parallel spatial split (v7x megacore utilization at small B)


def _cdiv(a, b):
    return -(-a // b)


def _round_up(v, m):
    return _cdiv(v, m) * m


def _dice_partial_kernel(x_ref, t_ref, out_ref, *, tr, need_mask):
    # x_ref:   (1, C, TR, 128)  per-class scores (input dtype, upcast to f32 in vregs)
    # t_ref:   (1, 1, TR, 128)  int8 labels (-1 marks padded / out-of-range rows)
    # out_ref: (1, 12, 8, 128)  f32 partials, row = stat*4 + class, resident across axis 2
    j = pl.program_id(2)

    @pl.when(j == 0)
    def _():
        out_ref[...] = jnp.zeros_like(out_ref)

    # One int8 -> int32 unpack per step, hoisted out of the class loop.
    labels = t_ref[0, 0].astype(jnp.int32)                       # (TR, 128)
    if need_mask:
        valid = labels >= 0                                      # real-pixel mask

    for c in range(N_CLASSES):                                   # unrolled, 4 classes
        xc = x_ref[0, c].astype(jnp.float32)                     # (TR, 128)
        if need_mask:
            # Select (not multiply): undefined rows of partial/duplicated score blocks
            # (possibly NaN) are forced to 0 before the x*x term.
            xc = jnp.where(valid, xc, 0.0)
        onehot = (labels == c).astype(jnp.float32)               # (TR, 128)
        inter = xc * onehot
        sq = xc * xc
        # Reduce only to vreg granularity: the reshape is free (splits the sublane dim on a
        # vreg boundary) and sum(axis=0) is a tree of whole-vreg vadds on the VPU.
        out_ref[0, 0 * N_CLASSES + c] += inter.reshape(tr // 8, 8, LANE).sum(axis=0)
        out_ref[0, 1 * N_CLASSES + c] += onehot.reshape(tr // 8, 8, LANE).sum(axis=0)
        out_ref[0, 2 * N_CLASSES + c] += sq.reshape(tr // 8, 8, LANE).sum(axis=0)


@functools.partial(jax.jit, static_argnames=("tile_rows",))
def weighted_dice_ce_forward(inputs, targets, tile_rows=2048):
    """Equivalent of WeightedDiceCE().forward(inputs, targets)."""
    B, C, H, W = inputs.shape
    assert C == N_CLASSES, "DiceLoss is hard-coded to 4 classes"
    HW = H * W

    # Lane-dense spatial layout: HW -> (R, 128).
    R = _cdiv(HW, LANE)
    hw_128 = R * LANE

    # Row tile: multiple of 32 (int8 label tiling), split SPLIT ways, capped by tile_rows.
    TR = _round_up(min(tile_rows, _round_up(_cdiv(R, SPLIT), 32)), 32)
    n_tiles = _cdiv(R, TR)                 # real score tiles
    n_half = _cdiv(n_tiles, SPLIT)         # tiles per split half
    R_pad = SPLIT * n_half * TR            # label coverage only (labels are tiny)
    need_mask = R_pad > R                  # ragged / duplicated tiles exist

    # Scores: pad at most to the next 128-lane multiple (zero copy when HW % 128 == 0);
    # never padded to R_pad (that would ~double HBM traffic for this mem-bound kernel).
    x = inputs.reshape(B, C, HW)
    if hw_128 != HW:
        x = jnp.pad(x, ((0, 0), (0, 0), (0, hw_128 - HW)))
    x = x.reshape(B, C, R, LANE)

    # Labels: int8, padded with -1 (matches no class) to the full grid coverage.
    t = targets.reshape(B, 1, HW).astype(jnp.int8)
    t = jnp.pad(t, ((0, 0), (0, 0), (0, R_pad * LANE - HW)), constant_values=-1)
    t = t.reshape(B, 1, R_pad, LANE)

    grid = (B, SPLIT, n_half)              # (parallel, parallel, arbitrary reduction)

    def x_map(b, p, j):
        # Clamp so a fully out-of-range tile re-reads the last real tile; its contribution
        # is masked out via the -1 labels, and identical consecutive indices elide the DMA.
        return (b, 0, jnp.minimum(p * n_half + j, n_tiles - 1), 0)

    def t_map(b, p, j):
        return (b, 0, p * n_half + j, 0)

    def o_map(b, p, j):
        return (b * SPLIT + p, 0, 0, 0)

    x_block_bytes = N_CLASSES * TR * LANE * x.dtype.itemsize
    cost = pl.CostEstimate(
        flops=int(7 * B * N_CLASSES * R * LANE),
        transcendentals=0,
        bytes_accessed=int(x.size) * x.dtype.itemsize + int(t.size)
        + B * SPLIT * 3 * N_CLASSES * 8 * LANE * 4,
    )

    partial = pl.pallas_call(
        functools.partial(_dice_partial_kernel, tr=TR, need_mask=need_mask),
        out_shape=jax.ShapeDtypeStruct((B * SPLIT, 3 * N_CLASSES, 8, LANE), jnp.float32),
        grid_spec=pltpu.PrefetchScalarGridSpec(
            num_scalar_prefetch=0,
            grid=grid,
            in_specs=[
                pl.BlockSpec((1, N_CLASSES, TR, LANE), x_map),
                pl.BlockSpec((1, 1, TR, LANE), t_map),
            ],
            out_specs=pl.BlockSpec((1, 3 * N_CLASSES, 8, LANE), o_map),
        ),
        compiler_params=pltpu.CompilerParams(
            dimension_semantics=("parallel", "parallel", "arbitrary"),
            vmem_limit_bytes=int(max(32 << 20, 3 * x_block_bytes + (4 << 20))),
        ),
        cost_estimate=cost,
    )(x, t)

    # Tiny finalize in plain JAX: fold batch/split/sublane/lane partials, then dice math.
    sums = jnp.sum(partial, axis=(0, 2, 3)).reshape(3, N_CLASSES)   # (3, C)
    intersect, y_sum, z_sum = sums[0], sums[1], sums[2]
    dice = 1.0 - (2.0 * intersect + SMOOTH) / (z_sum + y_sum + SMOOTH)   # per-class loss
    loss = jnp.sum(dice) / N_CLASSES                                     # uniform weights
    return loss, dice[1], dice[2], dice[3]


def _reference(inputs, targets):
    """Pure-JAX reference mirroring the PyTorch DiceLoss semantics."""
    t = targets.astype(jnp.int32)
    onehot = jnp.concatenate(
        [(t == i).astype(jnp.float32) for i in range(N_CLASSES)], axis=1)  # (B, 4, H, W)

    def dice(score, tgt):
        inter = jnp.sum(score * tgt)
        ys = jnp.sum(tgt * tgt)
        zs = jnp.sum(score * score)
        return 1.0 - (2.0 * inter + SMOOTH) / (zs + ys + SMOOTH)

    dices = [dice(inputs[:, i], onehot[:, i]) for i in range(N_CLASSES)]
    return sum(dices) / N_CLASSES, dices[1], dices[2], dices[3]


if __name__ == "__main__":
    key = jax.random.PRNGKey(0)
    k_in, k_tgt = jax.random.split(key)

    B, C, H, W = 2, 4, 16, 16
    inputs = jax.random.normal(k_in, (B, C, H, W), dtype=jnp.float32)
    # targets come in as (B, 1, H, W) float labels in [0, 4); forward casts to long
    targets = jax.random.randint(k_tgt, (B, 1, H, W), 0, N_CLASSES).astype(jnp.float32)

    result = weighted_dice_ce_forward(inputs, targets)
    result = jax.block_until_ready(result)

    ref = _reference(inputs, targets)
    for got, want in zip(result, ref):
        assert jnp.allclose(got, want, rtol=1e-5, atol=1e-5), (got, want)

    print("KERNEL_OK")
</pallas_src>

<mosaic_0001>
module attributes {stable_mosaic.version = 11 : i64} {
  func.func @_dice_partial_kernel(%arg0: i32, %arg1: i32, %arg2: i32, %arg3: memref<1x4x32x128xf32, #tpu.memory_space<vmem>>, %arg4: memref<1x1x32x128xi8, #tpu.memory_space<vmem>>, %arg5: memref<1x12x8x128xf32, #tpu.memory_space<vmem>>) attributes {dimension_semantics = [#tpu.dimension_semantics<parallel>, #tpu.dimension_semantics<parallel>, #tpu.dimension_semantics<arbitrary>], iteration_bounds = array<i64: 2, 2, 1>, scalar_prefetch = 0 : i64, scratch_operands = 0 : i64, tpu.core_type = #tpu.core_type<tc>, window_params = [{transform_indices = @transform_0, window_bounds = array<i64: 1, 4, 32, 128>}, {transform_indices = @transform_1, window_bounds = array<i64: 1, 1, 32, 128>}, {transform_indices = @transform_2, window_bounds = array<i64: 1, 12, 8, 128>}]} {
    %c0_i32 = arith.constant 0 : i32
    %0 = arith.cmpi eq, %arg2, %c0_i32 : i32
    %1 = arith.extui %0 : i1 to i32
    %c0_i32_0 = arith.constant 0 : i32
    %2 = arith.cmpi ne, %1, %c0_i32_0 : i32
    scf.if %2 {
      %cst_122 = arith.constant 0.000000e+00 : f32
      %144 = vector.broadcast %cst_122 : f32 to vector<1x12x8x128xf32>
      %c0_123 = arith.constant 0 : index
      %c0_124 = arith.constant 0 : index
      %c0_125 = arith.constant 0 : index
      %c0_126 = arith.constant 0 : index
      %145 = vector.load %arg5[%c0_123, %c0_124, %c0_125, %c0_126] : memref<1x12x8x128xf32, #tpu.memory_space<vmem>>, vector<1x12x8x128xf32>
      tpu.vector_store %arg5[%c0_123, %c0_124, %c0_125, %c0_126], %144 {strides = array<i32>} : memref<1x12x8x128xf32, #tpu.memory_space<vmem>>, vector<1x12x8x128xf32>,
    } else {
    }
    %c0 = arith.constant 0 : index
    %c0_1 = arith.constant 0 : index
    %c0_2 = arith.constant 0 : index
    %c0_3 = arith.constant 0 : index
    %3 = vector.load %arg4[%c0, %c0_1, %c0_2, %c0_3] : memref<1x1x32x128xi8, #tpu.memory_space<vmem>>, vector<1x1x32x128xi8>
    %4 = vector.shape_cast %3 : vector<1x1x32x128xi8> to vector<32x128xi8>
    %5 = arith.extsi %4 : vector<32x128xi8> to vector<32x128xi32>
    %c0_i32_4 = arith.constant 0 : i32
    %6 = vector.broadcast %c0_i32_4 : i32 to vector<32x128xi32>
    %7 = arith.cmpi sge, %5, %6 : vector<32x128xi32>
    %c0_5 = arith.constant 0 : index
    %c0_6 = arith.constant 0 : index
    %c0_7 = arith.constant 0 : index
    %c0_8 = arith.constant 0 : index
    %8 = vector.load %arg3[%c0_5, %c0_6, %c0_7, %c0_8] : memref<1x4x32x128xf32, #tpu.memory_space<vmem>>, vector<1x1x32x128xf32>
    %9 = vector.shape_cast %8 : vector<1x1x32x128xf32> to vector<32x128xf32>
    %cst = arith.constant 0.000000e+00 : f32
    %10 = vector.broadcast %cst : f32 to vector<32x128xf32>
    %11 = arith.select %7, %9, %10 : vector<32x128xi1>, vector<32x128xf32>
    %c0_i32_9 = arith.constant 0 : i32
    %12 = vector.broadcast %c0_i32_9 : i32 to vector<32x128xi32>
    %13 = arith.cmpi eq, %5, %12 : vector<32x128xi32>
    %14 = arith.extui %13 : vector<32x128xi1> to vector<32x128xi32>
    %15 = arith.sitofp %14 : vector<32x128xi32> to vector<32x128xf32>
    %16 = arith.mulf %11, %15 : vector<32x128xf32>
    %17 = arith.mulf %11, %11 : vector<32x128xf32>
    %c0_10 = arith.constant 0 : index
    %c0_11 = arith.constant 0 : index
    %c0_12 = arith.constant 0 : index
    %c0_13 = arith.constant 0 : index
    %18 = vector.load %arg5[%c0_10, %c0_11, %c0_12, %c0_13] : memref<1x12x8x128xf32, #tpu.memory_space<vmem>>, vector<1x1x8x128xf32>
    %19 = vector.shape_cast %18 : vector<1x1x8x128xf32> to vector<8x128xf32>
    %20 = vector.shape_cast %16 : vector<32x128xf32> to vector<4x8x128xf32>
    %cst_14 = arith.constant dense<0.000000e+00> : vector<8x128xf32>
    %21 = vector.multi_reduction <add>, %20, %cst_14 [0] : vector<4x8x128xf32> to vector<8x128xf32>
    %22 = arith.addf %19, %21 : vector<8x128xf32>
    %c0_15 = arith.constant 0 : index
    %c0_16 = arith.constant 0 : index
    %c0_17 = arith.constant 0 : index
    %c0_18 = arith.constant 0 : index
    %23 = vector.load %arg5[%c0_15, %c0_16, %c0_17, %c0_18] : memref<1x12x8x128xf32, #tpu.memory_space<vmem>>, vector<1x1x8x128xf32>
    %24 = vector.shape_cast %23 : vector<1x1x8x128xf32> to vector<8x128xf32>
    %25 = vector.shape_cast %22 : vector<8x128xf32> to vector<1x1x8x128xf32>
    tpu.vector_store %arg5[%c0_15, %c0_16, %c0_17, %c0_18], %25 {strides = array<i32>} : memref<1x12x8x128xf32, #tpu.memory_space<vmem>>, vector<1x1x8x128xf32>,
    %c0_19 = arith.constant 0 : index
    %c4 = arith.constant 4 : index
    %c0_20 = arith.constant 0 : index
    %c0_21 = arith.constant 0 : index
    %26 = vector.load %arg5[%c0_19, %c4, %c0_20, %c0_21] : memref<1x12x8x128xf32, #tpu.memory_space<vmem>>, vector<1x1x8x128xf32>
    %27 = vector.shape_cast %26 : vector<1x1x8x128xf32> to vector<8x128xf32>
    %28 = vector.shape_cast %15 : vector<32x128xf32> to vector<4x8x128xf32>
    %cst_22 = arith.constant dense<0.000000e+00> : vector<8x128xf32>
    %29 = vector.multi_reduction <add>, %28, %cst_22 [0] : vector<4x8x128xf32> to vector<8x128xf32>
    %30 = arith.addf %27, %29 : vector<8x128xf32>
    %c0_23 = arith.constant 0 : index
    %c4_24 = arith.constant 4 : index
    %c0_25 = arith.constant 0 : index
    %c0_26 = arith.constant 0 : index
    %31 = vector.load %arg5[%c0_23, %c4_24, %c0_25, %c0_26] : memref<1x12x8x128xf32, #tpu.memory_space<vmem>>, vector<1x1x8x128xf32>
    %32 = vector.shape_cast %31 : vector<1x1x8x128xf32> to vector<8x128xf32>
    %33 = vector.shape_cast %30 : vector<8x128xf32> to vector<1x1x8x128xf32>
    tpu.vector_store %arg5[%c0_23, %c4_24, %c0_25, %c0_26], %33 {strides = array<i32>} : memref<1x12x8x128xf32, #tpu.memory_space<vmem>>, vector<1x1x8x128xf32>,
    %c0_27 = arith.constant 0 : index
    %c8 = arith.constant 8 : index
    %c0_28 = arith.constant 0 : index
    %c0_29 = arith.constant 0 : index
    %34 = vector.load %arg5[%c0_27, %c8, %c0_28, %c0_29] : memref<1x12x8x128xf32, #tpu.memory_space<vmem>>, vector<1x1x8x128xf32>
    %35 = vector.shape_cast %34 : vector<1x1x8x128xf32> to vector<8x128xf32>
    %36 = vector.shape_cast %17 : vector<32x128xf32> to vector<4x8x128xf32>
    %cst_30 = arith.constant dense<0.000000e+00> : vector<8x128xf32>
    %37 = vector.multi_reduction <add>, %36, %cst_30 [0] : vector<4x8x128xf32> to vector<8x128xf32>
    %38 = arith.addf %35, %37 : vector<8x128xf32>
    %c0_31 = arith.constant 0 : index
    %c8_32 = arith.constant 8 : index
    %c0_33 = arith.constant 0 : index
    %c0_34 = arith.constant 0 : index
    %39 = vector.load %arg5[%c0_31, %c8_32, %c0_33, %c0_34] : memref<1x12x8x128xf32, #tpu.memory_space<vmem>>, vector<1x1x8x128xf32>
    %40 = vector.shape_cast %39 : vector<1x1x8x128xf32> to vector<8x128xf32>
    %41 = vector.shape_cast %38 : vector<8x128xf32> to vector<1x1x8x128xf32>
    tpu.vector_store %arg5[%c0_31, %c8_32, %c0_33, %c0_34], %41 {strides = array<i32>} : memref<1x12x8x128xf32, #tpu.memory_space<vmem>>, vector<1x1x8x128xf32>,
    %c0_35 = arith.constant 0 : index
    %c1 = arith.constant 1 : index
    %c0_36 = arith.constant 0 : index
    %c0_37 = arith.constant 0 : index
    %42 = vector.load %arg3[%c0_35, %c1, %c0_36, %c0_37] : memref<1x4x32x128xf32, #tpu.memory_space<vmem>>, vector<1x1x32x128xf32>
    %43 = vector.shape_cast %42 : vector<1x1x32x128xf32> to vector<32x128xf32>
    %cst_38 = arith.constant 0.000000e+00 : f32
    %44 = vector.broadcast %cst_38 : f32 to vector<32x128xf32>
    %45 = arith.select %7, %43, %44 : vector<32x128xi1>, vector<32x128xf32>
    %c1_i32 = arith.constant 1 : i32
    %46 = vector.broadcast %c1_i32 : i32 to vector<32x128xi32>
    %47 = arith.cmpi eq, %5, %46 : vector<32x128xi32>
    %48 = arith.extui %47 : vector<32x128xi1> to vector<32x128xi32>
    %49 = arith.sitofp %48 : vector<32x128xi32> to vector<32x128xf32>
    %50 = arith.mulf %45, %49 : vector<32x128xf32>
    %51 = arith.mulf %45, %45 : vector<32x128xf32>
    %c0_39 = arith.constant 0 : index
    %c1_40 = arith.constant 1 : index
    %c0_41 = arith.constant 0 : index
    %c0_42 = arith.constant 0 : index
    %52 = vector.load %arg5[%c0_39, %c1_40, %c0_41, %c0_42] : memref<1x12x8x128xf32, #tpu.memory_space<vmem>>, vector<1x1x8x128xf32>
    %53 = vector.shape_cast %52 : vector<1x1x8x128xf32> to vector<8x128xf32>
    %54 = vector.shape_cast %50 : vector<32x128xf32> to vector<4x8x128xf32>
    %cst_43 = arith.constant dense<0.000000e+00> : vector<8x128xf32>
    %55 = vector.multi_reduction <add>, %54, %cst_43 [0] : vector<4x8x128xf32> to vector<8x128xf32>
    %56 = arith.addf %53, %55 : vector<8x128xf32>
    %c0_44 = arith.constant 0 : index
    %c1_45 = arith.constant 1 : index
    %c0_46 = arith.constant 0 : index
    %c0_47 = arith.constant 0 : index
    %57 = vector.load %arg5[%c0_44, %c1_45, %c0_46, %c0_47] : memref<1x12x8x128xf32, #tpu.memory_space<vmem>>, vector<1x1x8x128xf32>
    %58 = vector.shape_cast %57 : vector<1x1x8x128xf32> to vector<8x128xf32>
    %59 = vector.shape_cast %56 : vector<8x128xf32> to vector<1x1x8x128xf32>
    tpu.vector_store %arg5[%c0_44, %c1_45, %c0_46, %c0_47], %59 {strides = array<i32>} : memref<1x12x8x128xf32, #tpu.memory_space<vmem>>, vector<1x1x8x128xf32>,
    %c0_48 = arith.constant 0 : index
    %c5 = arith.constant 5 : index
    %c0_49 = arith.constant 0 : index
    %c0_50 = arith.constant 0 : index
    %60 = vector.load %arg5[%c0_48, %c5, %c0_49, %c0_50] : memref<1x12x8x128xf32, #tpu.memory_space<vmem>>, vector<1x1x8x128xf32>
    %61 = vector.shape_cast %60 : vector<1x1x8x128xf32> to vector<8x128xf32>
    %62 = vector.shape_cast %49 : vector<32x128xf32> to vector<4x8x128xf32>
    %cst_51 = arith.constant dense<0.000000e+00> : vector<8x128xf32>
    %63 = vector.multi_reduction <add>, %62, %cst_51 [0] : vector<4x8x128xf32> to vector<8x128xf32>
    %64 = arith.addf %61, %63 : vector<8x128xf32>
    %c0_52 = arith.constant 0 : index
    %c5_53 = arith.constant 5 : index
    %c0_54 = arith.constant 0 : index
    %c0_55 = arith.constant 0 : index
    %65 = vector.load %arg5[%c0_52, %c5_53, %c0_54, %c0_55] : memref<1x12x8x128xf32, #tpu.memory_space<vmem>>, vector<1x1x8x128xf32>
    %66 = vector.shape_cast %65 : vector<1x1x8x128xf32> to vector<8x128xf32>
    %67 = vector.shape_cast %64 : vector<8x128xf32> to vector<1x1x8x128xf32>
    tpu.vector_store %arg5[%c0_52, %c5_53, %c0_54, %c0_55], %67 {strides = array<i32>} : memref<1x12x8x128xf32, #tpu.memory_space<vmem>>, vector<1x1x8x128xf32>,
    %c0_56 = arith.constant 0 : index
    %c9 = arith.constant 9 : index
    %c0_57 = arith.constant 0 : index
    %c0_58 = arith.constant 0 : index
    %68 = vector.load %arg5[%c0_56, %c9, %c0_57, %c0_58] : memref<1x12x8x128xf32, #tpu.memory_space<vmem>>, vector<1x1x8x128xf32>
    %69 = vector.shape_cast %68 : vector<1x1x8x128xf32> to vector<8x128xf32>
    %70 = vector.shape_cast %51 : vector<32x128xf32> to vector<4x8x128xf32>
    %cst_59 = arith.constant dense<0.000000e+00> : vector<8x128xf32>
    %71 = vector.multi_reduction <add>, %70, %cst_59 [0] : vector<4x8x128xf32> to vector<8x128xf32>
    %72 = arith.addf %69, %71 : vector<8x128xf32>
    %c0_60 = arith.constant 0 : index
    %c9_61 = arith.constant 9 : index
    %c0_62 = arith.constant 0 : index
    %c0_63 = arith.constant 0 : index
    %73 = vector.load %arg5[%c0_60, %c9_61, %c0_62, %c0_63] : memref<1x12x8x128xf32, #tpu.memory_space<vmem>>, vector<1x1x8x128xf32>
    %74 = vector.shape_cast %73 : vector<1x1x8x128xf32> to vector<8x128xf32>
    %75 = vector.shape_cast %72 : vector<8x128xf32> to vector<1x1x8x128xf32>
    tpu.vector_store %arg5[%c0_60, %c9_61, %c0_62, %c0_63], %75 {strides = array<i32>} : memref<1x12x8x128xf32, #tpu.memory_space<vmem>>, vector<1x1x8x128xf32>,
    %c0_64 = arith.constant 0 : index
    %c2 = arith.constant 2 : index
    %c0_65 = arith.constant 0 : index
    %c0_66 = arith.constant 0 : index
    %76 = vector.load %arg3[%c0_64, %c2, %c0_65, %c0_66] : memref<1x4x32x128xf32, #tpu.memory_space<vmem>>, vector<1x1x32x128xf32>
    %77 = vector.shape_cast %76 : vector<1x1x32x128xf32> to vector<32x128xf32>
    %cst_67 = arith.constant 0.000000e+00 : f32
    %78 = vector.broadcast %cst_67 : f32 to vector<32x128xf32>
    %79 = arith.select %7, %77, %78 : vector<32x128xi1>, vector<32x128xf32>
    %c2_i32 = arith.constant 2 : i32
    %80 = vector.broadcast %c2_i32 : i32 to vector<32x128xi32>
    %81 = arith.cmpi eq, %5, %80 : vector<32x128xi32>
    %82 = arith.extui %81 : vector<32x128xi1> to vector<32x128xi32>
    %83 = arith.sitofp %82 : vector<32x128xi32> to vector<32x128xf32>
    %84 = arith.mulf %79, %83 : vector<32x128xf32>
    %85 = arith.mulf %79, %79 : vector<32x128xf32>
    %c0_68 = arith.constant 0 : index
    %c2_69 = arith.constant 2 : index
    %c0_70 = arith.constant 0 : index
    %c0_71 = arith.constant 0 : index
    %86 = vector.load %arg5[%c0_68, %c2_69, %c0_70, %c0_71] : memref<1x12x8x128xf32, #tpu.memory_space<vmem>>, vector<1x1x8x128xf32>
    %87 = vector.shape_cast %86 : vector<1x1x8x128xf32> to vector<8x128xf32>
    %88 = vector.shape_cast %84 : vector<32x128xf32> to vector<4x8x128xf32>
    %cst_72 = arith.constant dense<0.000000e+00> : vector<8x128xf32>
    %89 = vector.multi_reduction <add>, %88, %cst_72 [0] : vector<4x8x128xf32> to vector<8x128xf32>
    %90 = arith.addf %87, %89 : vector<8x128xf32>
    %c0_73 = arith.constant 0 : index
    %c2_74 = arith.constant 2 : index
    %c0_75 = arith.constant 0 : index
    %c0_76 = arith.constant 0 : index
    %91 = vector.load %arg5[%c0_73, %c2_74, %c0_75, %c0_76] : memref<1x12x8x128xf32, #tpu.memory_space<vmem>>, vector<1x1x8x128xf32>
    %92 = vector.shape_cast %91 : vector<1x1x8x128xf32> to vector<8x128xf32>
    %93 = vector.shape_cast %90 : vector<8x128xf32> to vector<1x1x8x128xf32>
    tpu.vector_store %arg5[%c0_73, %c2_74, %c0_75, %c0_76], %93 {strides = array<i32>} : memref<1x12x8x128xf32, #tpu.memory_space<vmem>>, vector<1x1x8x128xf32>,
    %c0_77 = arith.constant 0 : index
    %c6 = arith.constant 6 : index
    %c0_78 = arith.constant 0 : index
    %c0_79 = arith.constant 0 : index
    %94 = vector.load %arg5[%c0_77, %c6, %c0_78, %c0_79] : memref<1x12x8x128xf32, #tpu.memory_space<vmem>>, vector<1x1x8x128xf32>
    %95 = vector.shape_cast %94 : vector<1x1x8x128xf32> to vector<8x128xf32>
    %96 = vector.shape_cast %83 : vector<32x128xf32> to vector<4x8x128xf32>
    %cst_80 = arith.constant dense<0.000000e+00> : vector<8x128xf32>
    %97 = vector.multi_reduction <add>, %96, %cst_80 [0] : vector<4x8x128xf32> to vector<8x128xf32>
    %98 = arith.addf %95, %97 : vector<8x128xf32>
    %c0_81 = arith.constant 0 : index
    %c6_82 = arith.constant 6 : index
    %c0_83 = arith.constant 0 : index
    %c0_84 = arith.constant 0 : index
    %99 = vector.load %arg5[%c0_81, %c6_82, %c0_83, %c0_84] : memref<1x12x8x128xf32, #tpu.memory_space<vmem>>, vector<1x1x8x128xf32>
    %100 = vector.shape_cast %99 : vector<1x1x8x128xf32> to vector<8x128xf32>
    %101 = vector.shape_cast %98 : vector<8x128xf32> to vector<1x1x8x128xf32>
    tpu.vector_store %arg5[%c0_81, %c6_82, %c0_83, %c0_84], %101 {strides = array<i32>} : memref<1x12x8x128xf32, #tpu.memory_space<vmem>>, vector<1x1x8x128xf32>,
    %c0_85 = arith.constant 0 : index
    %c10 = arith.constant 10 : index
    %c0_86 = arith.constant 0 : index
    %c0_87 = arith.constant 0 : index
    %102 = vector.load %arg5[%c0_85, %c10, %c0_86, %c0_87] : memref<1x12x8x128xf32, #tpu.memory_space<vmem>>, vector<1x1x8x128xf32>
    %103 = vector.shape_cast %102 : vector<1x1x8x128xf32> to vector<8x128xf32>
    %104 = vector.shape_cast %85 : vector<32x128xf32> to vector<4x8x128xf32>
    %cst_88 = arith.constant dense<0.000000e+00> : vector<8x128xf32>
    %105 = vector.multi_reduction <add>, %104, %cst_88 [0] : vector<4x8x128xf32> to vector<8x128xf32>
    %106 = arith.addf %103, %105 : vector<8x128xf32>
    %c0_89 = arith.constant 0 : index
    %c10_90 = arith.constant 10 : index
    %c0_91 = arith.constant 0 : index
    %c0_92 = arith.constant 0 : index
    %107 = vector.load %arg5[%c0_89, %c10_90, %c0_91, %c0_92] : memref<1x12x8x128xf32, #tpu.memory_space<vmem>>, vector<1x1x8x128xf32>
    %108 = vector.shape_cast %107 : vector<1x1x8x128xf32> to vector<8x128xf32>
    %109 = vector.shape_cast %106 : vector<8x128xf32> to vector<1x1x8x128xf32>
    tpu.vector_store %arg5[%c0_89, %c10_90, %c0_91, %c0_92], %109 {strides = array<i32>} : memref<1x12x8x128xf32, #tpu.memory_space<vmem>>, vector<1x1x8x128xf32>,
    %c0_93 = arith.constant 0 : index
    %c3 = arith.constant 3 : index
    %c0_94 = arith.constant 0 : index
    %c0_95 = arith.constant 0 : index
    %110 = vector.load %arg3[%c0_93, %c3, %c0_94, %c0_95] : memref<1x4x32x128xf32, #tpu.memory_space<vmem>>, vector<1x1x32x128xf32>
    %111 = vector.shape_cast %110 : vector<1x1x32x128xf32> to vector<32x128xf32>
    %cst_96 = arith.constant 0.000000e+00 : f32
    %112 = vector.broadcast %cst_96 : f32 to vector<32x128xf32>
    %113 = arith.select %7, %111, %112 : vector<32x128xi1>, vector<32x128xf32>
    %c3_i32 = arith.constant 3 : i32
    %114 = vector.broadcast %c3_i32 : i32 to vector<32x128xi32>
    %115 = arith.cmpi eq, %5, %114 : vector<32x128xi32>
    %116 = arith.extui %115 : vector<32x128xi1> to vector<32x128xi32>
    %117 = arith.sitofp %116 : vector<32x128xi32> to vector<32x128xf32>
    %118 = arith.mulf %113, %117 : vector<32x128xf32>
    %119 = arith.mulf %113, %113 : vector<32x128xf32>
    %c0_97 = arith.constant 0 : index
    %c3_98 = arith.constant 3 : index
    %c0_99 = arith.constant 0 : index
    %c0_100 = arith.constant 0 : index
    %120 = vector.load %arg5[%c0_97, %c3_98, %c0_99, %c0_100] : memref<1x12x8x128xf32, #tpu.memory_space<vmem>>, vector<1x1x8x128xf32>
    %121 = vector.shape_cast %120 : vector<1x1x8x128xf32> to vector<8x128xf32>
    %122 = vector.shape_cast %118 : vector<32x128xf32> to vector<4x8x128xf32>
    %cst_101 = arith.constant dense<0.000000e+00> : vector<8x128xf32>
    %123 = vector.multi_reduction <add>, %122, %cst_101 [0] : vector<4x8x128xf32> to vector<8x128xf32>
    %124 = arith.addf %121, %123 : vector<8x128xf32>
    %c0_102 = arith.constant 0 : index
    %c3_103 = arith.constant 3 : index
    %c0_104 = arith.constant 0 : index
    %c0_105 = arith.constant 0 : index
    %125 = vector.load %arg5[%c0_102, %c3_103, %c0_104, %c0_105] : memref<1x12x8x128xf32, #tpu.memory_space<vmem>>, vector<1x1x8x128xf32>
    %126 = vector.shape_cast %125 : vector<1x1x8x128xf32> to vector<8x128xf32>
    %127 = vector.shape_cast %124 : vector<8x128xf32> to vector<1x1x8x128xf32>
    tpu.vector_store %arg5[%c0_102, %c3_103, %c0_104, %c0_105], %127 {strides = array<i32>} : memref<1x12x8x128xf32, #tpu.memory_space<vmem>>, vector<1x1x8x128xf32>,
    %c0_106 = arith.constant 0 : index
    %c7 = arith.constant 7 : index
    %c0_107 = arith.constant 0 : index
    %c0_108 = arith.constant 0 : index
    %128 = vector.load %arg5[%c0_106, %c7, %c0_107, %c0_108] : memref<1x12x8x128xf32, #tpu.memory_space<vmem>>, vector<1x1x8x128xf32>
    %129 = vector.shape_cast %128 : vector<1x1x8x128xf32> to vector<8x128xf32>
    %130 = vector.shape_cast %117 : vector<32x128xf32> to vector<4x8x128xf32>
    %cst_109 = arith.constant dense<0.000000e+00> : vector<8x128xf32>
    %131 = vector.multi_reduction <add>, %130, %cst_109 [0] : vector<4x8x128xf32> to vector<8x128xf32>
    %132 = arith.addf %129, %131 : vector<8x128xf32>
    %c0_110 = arith.constant 0 : index
    %c7_111 = arith.constant 7 : index
    %c0_112 = arith.constant 0 : index
    %c0_113 = arith.constant 0 : index
    %133 = vector.load %arg5[%c0_110, %c7_111, %c0_112, %c0_113] : memref<1x12x8x128xf32, #tpu.memory_space<vmem>>, vector<1x1x8x128xf32>
    %134 = vector.shape_cast %133 : vector<1x1x8x128xf32> to vector<8x128xf32>
    %135 = vector.shape_cast %132 : vector<8x128xf32> to vector<1x1x8x128xf32>
    tpu.vector_store %arg5[%c0_110, %c7_111, %c0_112, %c0_113], %135 {strides = array<i32>} : memref<1x12x8x128xf32, #tpu.memory_space<vmem>>, vector<1x1x8x128xf32>,
    %c0_114 = arith.constant 0 : index
    %c11 = arith.constant 11 : index
    %c0_115 = arith.constant 0 : index
    %c0_116 = arith.constant 0 : index
    %136 = vector.load %arg5[%c0_114, %c11, %c0_115, %c0_116] : memref<1x12x8x128xf32, #tpu.memory_space<vmem>>, vector<1x1x8x128xf32>
    %137 = vector.shape_cast %136 : vector<1x1x8x128xf32> to vector<8x128xf32>
    %138 = vector.shape_cast %119 : vector<32x128xf32> to vector<4x8x128xf32>
    %cst_117 = arith.constant dense<0.000000e+00> : vector<8x128xf32>
    %139 = vector.multi_reduction <add>, %138, %cst_117 [0] : vector<4x8x128xf32> to vector<8x128xf32>
    %140 = arith.addf %137, %139 : vector<8x128xf32>
    %c0_118 = arith.constant 0 : index
    %c11_119 = arith.constant 11 : index
    %c0_120 = arith.constant 0 : index
    %c0_121 = arith.constant 0 : index
    %141 = vector.load %arg5[%c0_118, %c11_119, %c0_120, %c0_121] : memref<1x12x8x128xf32, #tpu.memory_space<vmem>>, vector<1x1x8x128xf32>
    %142 = vector.shape_cast %141 : vector<1x1x8x128xf32> to vector<8x128xf32>
    %143 = vector.shape_cast %140 : vector<8x128xf32> to vector<1x1x8x128xf32>
    tpu.vector_store %arg5[%c0_118, %c11_119, %c0_120, %c0_121], %143 {strides = array<i32>} : memref<1x12x8x128xf32, #tpu.memory_space<vmem>>, vector<1x1x8x128xf32>,
    return
  }
  func.func @transform_0(%arg0: i32, %arg1: i32, %arg2: i32) -> (i32, i32, i32, i32) {
    %c1_i32 = arith.constant 1 : i32
    %0 = arith.muli %arg1, %c1_i32 : i32
    %1 = arith.addi %0, %arg2 : i32
    %c0_i32 = arith.constant 0 : i32
    %2 = arith.minsi %1, %c0_i32 : i32
    %c0_i32_0 = arith.constant 0 : i32
    %c0_i32_1 = arith.constant 0 : i32
    %c0_i32_2 = arith.constant 0 : i32
    return %arg0, %c0_i32_0, %2, %c0_i32_1 : i32, i32, i32, i32
  }
  func.func @transform_1(%arg0: i32, %arg1: i32, %arg2: i32) -> (i32, i32, i32, i32) {
    %c1_i32 = arith.constant 1 : i32
    %0 = arith.muli %arg1, %c1_i32 : i32
    %1 = arith.addi %0, %arg2 : i32
    %c0_i32 = arith.constant 0 : i32
    %c0_i32_0 = arith.constant 0 : i32
    %c0_i32_1 = arith.constant 0 : i32
    return %arg0, %c0_i32, %1, %c0_i32_0 : i32, i32, i32, i32
  }
  func.func @transform_2(%arg0: i32, %arg1: i32, %arg2: i32) -> (i32, i32, i32, i32) {
    %c2_i32 = arith.constant 2 : i32
    %0 = arith.muli %arg0, %c2_i32 : i32
    %1 = arith.addi %0, %arg1 : i32
    %c0_i32 = arith.constant 0 : i32
    %c0_i32_0 = arith.constant 0 : i32
    %c0_i32_1 = arith.constant 0 : i32
    %c0_i32_2 = arith.constant 0 : i32
    return %1, %c0_i32, %c0_i32_0, %c0_i32_1 : i32, i32, i32, i32
  }
}

</mosaic_0001>

<bundles_post_ra>
// kernel: weighted_dice_ce_forward.1
= control target key start
LH: loop header
LB: loop body
LE: loop exit
PB: predicated region body
PF: predicated region fallthrough
CT: control target
= control target key end

     0   :  { %s929_s9 = smov 0   ;;  %s931_s10 = smov 0   ;;  %s1160_s0 = inlined_call_operand.vmem [shape: f32[2,4,2,128], index: 0, kind: input, shape index: {}]   ;;  %s1161_s1 = inlined_call_operand.vmem [shape: s8[2,1,64,128], index: 1, kind: input, shape index: {}]   ;;  %s1162_s2 = inlined_call_operand.vmem [shape: f32[4,12,8,128], index: 2, kind: output, shape index: {}]  }
   0x1   :  { %s933_s11 = smov 0   ;;  %s935_s12 = smov 0  }
   0x2   :  { %s937_s13 = smov 0   ;;  %s939_s14 = smov 0  }
   0x3   :  { %s941_s15 = smov 0  }
   0x4 LB: > { %s27_s16 = sadd.s32 1, %s887_s13  ;;  %s31_s17 = sadd.s32 1, %s891_s14  ;;  %s895_s15 = sphi %s941_s15, %s12_s15   ;;  %s891_s14 = sphi %s939_s14, %s1171_s14   ;;  %s887_s13 = sphi %s937_s13, %s1170_s13   ;;  %s883_s12 = sphi %s935_s12, %s1169_s12   ;;  %s879_s11 = sphi %s933_s11, %s1168_s11   ;;  %s875_s10 = sphi %s931_s10, %s1167_s10   ;;  %s871_s9 = sphi %s929_s9, %s1166_s9  }
   0x5   : > { %p29_p0 = scmp.ge.s32.totalorder %s27_s16, 2  ;;  %p53_p1 = scmp.ne.s32.totalorder %s875_s10, %s871_s9 }
   0x6   : > { %p54_p3 = scmp.eq.s32.totalorder %s895_s15, 0  ;;  %s46_s19 = sadd.s32 1, %s875_s10 }
   0x7   : > { %s1173_s16 = smov (%p29_p0, %s27_s16), 0  ;;  %s1175_s17 = smov (!%p29_p0, %s31_s17), %s891_s14 }
   0x8   : > { %p33_p2 = scmp.ge.s32.totalorder %s1175_s17, 2  ;;  %p55_p4 = por %p54_p3, %p53_p1 }
   0x9   : > { %p665_p6 = scmp.ge.s32.totalorder %s895_s15, 4 }
   0xa   : > { %s1177_s17 = smov (%p33_p2, %s1175_s17), 0 }
   0xb   : > { %s41_s18 = ssub.s32 %s891_s14, %s1177_s17  ;;  %139 = sbr.rel (%p665_p6) target bundleno = 39 (0x27), region = 16 }
   0xc   : > { %p44_p5 = scmp.eq.s32.totalorder %s41_s18, 0 }
   0xe   : > { %s978_s20 = scalar_select %p44_p5, %s875_s10, %s46_s19  }
  0x12   : > { %142 = sbr.rel (!%p55_p4) target bundleno = 39 (0x27), region = 20  ;;  %s144_s21 = sand.u32 (%p55_p4), 1, %s875_s10  }
  0x13   : > { %s982_s22 = sshll.u32 (%p55_p4), %s144_s21, 7  ;;  %s868_s23 = sshll.u32 (%p55_p4), %s891_s14, 3 }
  0x14   : > { %s988_s26 = scalar_lea.vmem (%p55_p4), %s1160_s0, %s868_s23   ;;  %s146_s27 = scalar_lea.vmem (%p55_p4), [#allocation2], %s982_s22  }
  0x15   : > { %s1163_s28 = smov (%p55_p4), %s146_s27  ;;  %s1164_s29 = smov (%p55_p4), %s988_s26 }
  0x16   : > { %s998_s30 = smov (%p55_p4), 0   ;;  %s909_s3 = smov (%p55_p4), 0  }
  0x19 LB: >> { %v175_v0 = vld [vmem:[%s903_s29] sm:$0x3]  ;;  %v177_v1 = vld [vmem:[%s903_s29 + $0x2] sm:$0x3]  ;;  %v179_v2 = vld [vmem:[%s903_s29 + $0x4] sm:$0x3]  ;;  %s911_s3 = sphi %s909_s3, %s169_s3   ;;  %s907_s30 = sphi %s998_s30, %s1165_s30   ;;  %s903_s29 = sphi %s1164_s29, %s188_s29   ;;  %s899_s28 = sphi %s1163_s28, %s189_s28  }
  0x1a   : >> { %176 = vst [vmem:[%s899_s28] sm:$0x3] %v175_v0  ;;  %178 = vst [vmem:[%s899_s28 + $0x20] sm:$0x3] %v177_v1  ;;  %v181_v3 = vld [vmem:[%s903_s29 + $0x6] sm:$0x3]  ;;  %s183_s4 = sadd.s32 1, %s907_s30 }
  0x1b   : >> { %180 = vst [vmem:[%s899_s28 + $0x40] sm:$0x3] %v179_v2  ;;  %182 = vst [vmem:[%s899_s28 + $0x60] sm:$0x3] %v181_v3  ;;  %p184_p7 = scmp.ge.s32.totalorder %s183_s4, 1  ;;  %s169_s3 = sadd.s32 1, %s911_s3  }
  0x1c   : >> { %p168_p8 = scmp.ge.s32.totalorder %s169_s3, 1 }
  0x1d   : >> { %s1179_s4 = smov (%p184_p7, %s183_s4), 0 }
  0x1e   : >> { %s674_s5 = sshll.u32 %s1179_s4, 1  ;;  %s1165_s30 = smov %s1179_s4 }
  0x1f   : >> { %s188_s29 = scalar_lea.vmem %s988_s26, %s674_s5   ;;  %s189_s28 = scalar_lea.vmem %s146_s27, %s674_s5 [#allocation2]  }
  0x20   : > { %171 = sbr.rel (!%p168_p8) target bundleno = 25 (0x19), region = 127 }
  0x27 PF: > { %p676_p9 = scmp.ge.s32.totalorder %s895_s15, 1  ;;  %p248_p10 = scmp.lt.s32.totalorder %s895_s15, 5 }
  0x29   : > { %p249_p11 = pnand %p676_p9, %p248_p10 }
  0x2a   : > { %s255_s6 = sand.u32 (!%p249_p11), 1, %s871_s9   ;;  %p294_p12 = scmp.lt.s32.totalorder (!%p249_p11), %s883_s12, 1  ;;  %v913_v17 = vmov (!%p249_p11), 0.0  }
  0x2b   : > { %252 = sbr.rel (%p249_p11) target bundleno = 95 (0x5f), region = 65  ;;  %p296_p13 = scmp.lt.s32.totalorder (!%p249_p11), %s879_s11, 1 }
  0x2c   : > { %s680_s8 = sshll.u32 (!%p249_p11), %s883_s12, 1  ;;  %s677_s18 = sshll.u32 (!%p249_p11), %s255_s6, 7 }
  0x2d   : > { %s304_s23 = sadd.s32 (!%p249_p11), %s879_s11, %s680_s8  ;;  %s1024_s28 = scalar_lea.vmem (!%p249_p11), [#allocation2], %s677_s18 }
  0x2e   : > { %v337_v5 = vld [vmem:[%s1024_s28] sm:$0xff] (!%p249_p11)  ;;  %p305_p0 = scmp.lt.s32.totalorder (!%p249_p11), %s304_s23, 3  ;;  %v338_v10 = vld [vmem:[%s1024_s28 + $0x8] sm:$0xff] (!%p249_p11)  ;;  %v339_v11 = vld [vmem:[%s1024_s28 + $0x10] sm:$0xff] (!%p249_p11) }
  0x2f   : > { %v340_v12 = vld [vmem:[%s1024_s28 + $0x18] sm:$0xff] (!%p249_p11)  ;;  %v690_v22 = vld [vmem:[%s1024_s28 + $0x20] sm:$0xff] (!%p249_p11)  ;;  %v691_v23 = vld [vmem:[%s1024_s28 + $0x28] sm:$0xff] (!%p249_p11) }
  0x30   : > { %v692_v28 = vld [vmem:[%s1024_s28 + $0x30] sm:$0xff] (!%p249_p11)  ;;  %v693_v29 = vld [vmem:[%s1024_s28 + $0x38] sm:$0xff] (!%p249_p11)  ;;  %v704_v53 = vld [vmem:[%s1024_s28 + $0x40] sm:$0xff] (!%p249_p11) }
  0x31   : > { %v705_v57 = vld [vmem:[%s1024_s28 + $0x48] sm:$0xff] (!%p249_p11)  ;;  %v706_v58 = vld [vmem:[%s1024_s28 + $0x50] sm:$0xff] (!%p249_p11)  ;;  %v707_v62 = vld [vmem:[%s1024_s28 + $0x58] sm:$0xff] (!%p249_p11) }
  0x32   : > { %s295_s7 = scalar_select %p294_p12, %s883_s12, 1 }
  0x33   : > { %s297_s19 = scalar_select %p296_p13, %s879_s11, 1 }
  0x34   : > { %s678_s21 = sshll.u32 %s295_s7, 1  ;;  %s1181_s23 = smov (!%p305_p0, %s304_s23), 3 }
  0x35   : > { %s299_s22 = sadd.s32 %s678_s21, %s297_s19  ;;  %s734_s9 = smul.u32 96, %s1181_s23 }
  0x36   : > { %s679_s24 = sshll.u32 %s299_s22, 3 }
  0x37   : > { %s301_s27 = scalar_lea.vmem %s1161_s1, %s679_s24  ;;  %s1082_s29 = scalar_lea.vmem %s1162_s2, %s734_s9 }
  0x38   : > { %v328_v4 = vld [vmem:[%s301_s27] sm:$0xff] }
  0x39   : > { %v1027_v6 = vunpack.c.0.s8 %v328_v4  ;;  %v1029_v7 = vunpack.c.1.s8 %v328_v4  ;;  %v1031_v8 = vunpack.c.2.s8 %v328_v4  ;;  %v1033_v9 = vunpack.c.3.s8 %v328_v4 }
  0x3b   : > { %vm333_vm0 = vcmp.ge.s32.totalorder %v1027_v6, 0  ;;  %vm334_vm1 = vcmp.ge.s32.totalorder %v1029_v7, 0  ;;  %vm335_vm2 = vcmp.ge.s32.totalorder %v1031_v8, 0  ;;  %vm336_vm3 = vcmp.ge.s32.totalorder %v1033_v9, 0 }
  0x3c   : > { %v341_v13 = vsel %vm333_vm0, %v337_v5, 0.0  ;;  %v342_v14 = vsel %vm334_vm1, %v338_v10, 0.0  ;;  %v343_v15 = vsel %vm335_vm2, %v339_v11, 0.0  ;;  %v344_v16 = vsel %vm336_vm3, %v340_v12, 0.0 }
  0x3d   : > { %vm345_vm4 = vcmp.eq.s32.totalorder %v1027_v6, 0  ;;  %vm346_vm5 = vcmp.eq.s32.totalorder %v1029_v7, 0  ;;  %vm347_vm6 = vcmp.eq.s32.totalorder %v1031_v8, 0  ;;  %vm348_vm7 = vcmp.eq.s32.totalorder %v1033_v9, 0 }
  0x3e   : > { %v682_v18 = vsel %vm345_vm4, 1.0, %v913_v17  ;;  %v683_v19 = vsel %vm346_vm5, 1.0, %v913_v17  ;;  %v684_v20 = vsel %vm347_vm6, 1.0, %v913_v17  ;;  %v685_v21 = vsel %vm348_vm7, 1.0, %v913_v17 }
  0x3f   : > { %v357_v24 = vmul.f32 %v682_v18, %v341_v13  ;;  %v358_v25 = vmul.f32 %v683_v19, %v342_v14  ;;  %v359_v26 = vmul.f32 %v684_v20, %v343_v15  ;;  %v360_v27 = vmul.f32 %v685_v21, %v344_v16 }
  0x40   : > { %v373_v30 = vadd.f32 %v683_v19, %v682_v18  ;;  %v361_v31 = vmul.f32 %v341_v13, %v341_v13  ;;  %v362_v32 = vmul.f32 %v342_v14, %v342_v14  ;;  %v363_v33 = vmul.f32 %v343_v15, %v343_v15 }
  0x41   : > { %v366_v34 = vadd.f32 %v358_v25, %v357_v24  ;;  %v364_v35 = vmul.f32 %v344_v16, %v344_v16  ;;  %v390_v36 = vsel %vm333_vm0, %v690_v22, 0.0  ;;  %v391_v37 = vsel %vm334_vm1, %v691_v23, 0.0  ;;  %v718_v22 = vld [vmem:[%s1024_s28 + $0x60] sm:$0xff] }
  0x42   : > { %v374_v38 = vadd.f32 %v684_v20, %v373_v30  ;;  %v380_v39 = vadd.f32 %v362_v32, %v361_v31  ;;  %v392_v40 = vsel %vm335_vm2, %v692_v28, 0.0  ;;  %v393_v41 = vsel %vm336_vm3, %v693_v29, 0.0  ;;  %v720_v28 = vld [vmem:[%s1024_s28 + $0x70] sm:$0xff]  ;;  %v721_v29 = vld [vmem:[%s1024_s28 + $0x78] sm:$0xff] }
  0x43   : > { %v367_v42 = vadd.f32 %v366_v34, %v359_v26  ;;  %vm394_vm8 = vcmp.eq.s32.totalorder %v1027_v6, 1  ;;  %vm395_vm9 = vcmp.eq.s32.totalorder %v1029_v7, 1  ;;  %vm396_vm10 = vcmp.eq.s32.totalorder %v1031_v8, 1 }
  0x44   : > { %v375_v43 = vadd.f32 %v685_v21, %v374_v38  ;;  %v381_v44 = vadd.f32 %v380_v39, %v363_v33  ;;  %vm397_vm11 = vcmp.eq.s32.totalorder %v1033_v9, 1  ;;  %v694_v45 = vsel %vm394_vm8, 1.0, %v913_v17 }
  0x45   : > { %v368_v46 = vadd.f32 %v367_v42, %v360_v27  ;;  %v695_v47 = vsel %vm395_vm9, 1.0, %v913_v17  ;;  %v696_v48 = vsel %vm396_vm10, 1.0, %v913_v17  ;;  %v697_v49 = vsel %vm397_vm11, 1.0, %v913_v17  ;;  %v719_v27 = vld [vmem:[%s1024_s28 + $0x68] sm:$0xff] }
  0x46   : > { %v382_v50 = vadd.f32 %v381_v44, %v364_v35  ;;  %v406_v51 = vmul.f32 %v694_v45, %v390_v36  ;;  %v407_v52 = vmul.f32 %v695_v47, %v391_v37  ;;  %v408_v54 = vmul.f32 %v696_v48, %v392_v40  ;;  %687 = vst [vmem:[%s1082_s29 + $0x20] sm:$0xff] %v375_v43 }
  0x47   : > { %v409_v55 = vmul.f32 %v697_v49, %v393_v41  ;;  %v423_v56 = vadd.f32 %v695_v47, %v694_v45  ;;  %v410_v60 = vmul.f32 %v390_v36, %v390_v36  ;;  %v411_v61 = vmul.f32 %v391_v37, %v391_v37  ;;  %370 = vst [vmem:[%s1082_s29] sm:$0xff] %v368_v46 }
  0x48   : > { %v416_v59 = vadd.f32 %v407_v52, %v406_v51  ;;  %v412_v0 = vmul.f32 %v392_v40, %v392_v40  ;;  %v413_v1 = vmul.f32 %v393_v41, %v393_v41  ;;  %v440_v2 = vsel %vm333_vm0, %v704_v53, 0.0  ;;  %689 = vst [vmem:[%s1082_s29 + $0x40] sm:$0xff] %v382_v50 }
  0x49   : > { %v424_v63 = vadd.f32 %v696_v48, %v423_v56  ;;  %v430_v4 = vadd.f32 %v411_v61, %v410_v60  ;;  %v441_v5 = vsel %vm334_vm1, %v705_v57, 0.0  ;;  %v442_v10 = vsel %vm335_vm2, %v706_v58, 0.0 }
  0x4a   : > { %v417_v3 = vadd.f32 %v416_v59, %v408_v54  ;;  %v443_v12 = vsel %vm336_vm3, %v707_v62, 0.0  ;;  %vm444_vm12 = vcmp.eq.s32.totalorder %v1027_v6, 2  ;;  %vm445_vm13 = vcmp.eq.s32.totalorder %v1029_v7, 2 }
  0x4b   : > { %v425_v11 = vadd.f32 %v697_v49, %v424_v63  ;;  %v431_v14 = vadd.f32 %v430_v4, %v412_v0  ;;  %vm446_vm14 = vcmp.eq.s32.totalorder %v1031_v8, 2  ;;  %vm447_vm15 = vcmp.eq.s32.totalorder %v1033_v9, 2 }
  0x4c   : > { %v418_v13 = vadd.f32 %v417_v3, %v409_v55  ;;  %v708_v15 = vsel %vm444_vm12, 1.0, %v913_v17  ;;  %v709_v16 = vsel %vm445_vm13, 1.0, %v913_v17  ;;  %v710_v18 = vsel %vm446_vm14, 1.0, %v913_v17 }
  0x4d   : > { %v432_v19 = vadd.f32 %v431_v14, %v413_v1  ;;  %v711_v20 = vsel %vm447_vm15, 1.0, %v913_v17  ;;  %v456_v21 = vmul.f32 %v708_v15, %v440_v2  ;;  %701 = vst [vmem:[%s1082_s29 + $0x28] sm:$0xff] %v425_v11  ;;  %v457_v23 = vmul.f32 %v709_v16, %v441_v5 }
  0x4e   : > { %v458_v24 = vmul.f32 %v710_v18, %v442_v10  ;;  %v459_v25 = vmul.f32 %v711_v20, %v443_v12  ;;  %v473_v26 = vadd.f32 %v709_v16, %v708_v15  ;;  %699 = vst [vmem:[%s1082_s29 + $0x8] sm:$0xff] %v418_v13  ;;  %v460_v30 = vmul.f32 %v440_v2, %v440_v2 }
  0x4f   : > { %v461_v31 = vmul.f32 %v441_v5, %v441_v5  ;;  %v462_v32 = vmul.f32 %v442_v10, %v442_v10  ;;  %v466_v33 = vadd.f32 %v457_v23, %v456_v21  ;;  %v463_v35 = vmul.f32 %v443_v12, %v443_v12  ;;  %703 = vst [vmem:[%s1082_s29 + $0x48] sm:$0xff] %v432_v19 }
  0x50   : > { %v474_v34 = vadd.f32 %v710_v18, %v473_v26  ;;  %v490_v36 = vsel %vm333_vm0, %v718_v22, 0.0  ;;  %v491_v38 = vsel %vm334_vm1, %v719_v27, 0.0  ;;  %v492_v39 = vsel %vm335_vm2, %v720_v28, 0.0 }
  0x51   : > { %v480_v37 = vadd.f32 %v461_v31, %v460_v30  ;;  %v493_v40 = vsel %vm336_vm3, %v721_v29, 0.0  ;;  %v467_v41 = vadd.f32 %v466_v33, %v458_v24  ;;  %vm494_vm4 = vcmp.eq.s32.totalorder %v1027_v6, 3 }
  0x52   : > { %v475_v42 = vadd.f32 %v711_v20, %v474_v34  ;;  %vm495_vm5 = vcmp.eq.s32.totalorder %v1029_v7, 3  ;;  %vm496_vm0 = vcmp.eq.s32.totalorder %v1031_v8, 3  ;;  %vm497_vm6 = vcmp.eq.s32.totalorder %v1033_v9, 3 }
  0x53   : > { %v481_v43 = vadd.f32 %v480_v37, %v462_v32  ;;  %v722_v44 = vsel %vm494_vm4, 1.0, %v913_v17  ;;  %v468_v45 = vadd.f32 %v467_v41, %v459_v25  ;;  %v723_v46 = vsel %vm495_vm5, 1.0, %v913_v17 }
  0x54   : > { %v724_v47 = vsel %vm496_vm0, 1.0, %v913_v17  ;;  %v725_v49 = vsel %vm497_vm6, 1.0, %v913_v17  ;;  %v506_v6 = vmul.f32 %v722_v44, %v490_v36  ;;  %v507_v50 = vmul.f32 %v723_v46, %v491_v38  ;;  %715 = vst [vmem:[%s1082_s29 + $0x30] sm:$0xff] %v475_v42 }
  0x55   : > { %v482_v48 = vadd.f32 %v481_v43, %v463_v35  ;;  %v508_v7 = vmul.f32 %v724_v47, %v492_v39  ;;  %v509_v51 = vmul.f32 %v725_v49, %v493_v40  ;;  %v523_v8 = vadd.f32 %v723_v46, %v722_v44  ;;  %713 = vst [vmem:[%s1082_s29 + $0x10] sm:$0xff] %v468_v45 }
  0x56   : > { %v516_v9 = vadd.f32 %v507_v50, %v506_v6  ;;  %v510_v52 = vmul.f32 %v490_v36, %v490_v36  ;;  %v511_v53 = vmul.f32 %v491_v38, %v491_v38  ;;  %v512_v55 = vmul.f32 %v492_v39, %v492_v39 }
  0x57   : > { %v524_v54 = vadd.f32 %v724_v47, %v523_v8  ;;  %717 = vst [vmem:[%s1082_s29 + $0x50] sm:$0xff] %v482_v48  ;;  %v513_v57 = vmul.f32 %v493_v40, %v493_v40 }
  0x58   : > { %v517_v56 = vadd.f32 %v516_v9, %v508_v7  ;;  %v530_v58 = vadd.f32 %v511_v53, %v510_v52 }
  0x59   : > { %v525_v17 = vadd.f32 %v725_v49, %v524_v54 }
  0x5a   : > { %v518_v59 = vadd.f32 %v517_v56, %v509_v51  ;;  %v531_v60 = vadd.f32 %v530_v58, %v512_v55 }
  0x5b   : > { %729 = vst [vmem:[%s1082_s29 + $0x38] sm:$0xff] %v525_v17 }
  0x5c   : > { %v532_v61 = vadd.f32 %v531_v60, %v513_v57  ;;  %727 = vst [vmem:[%s1082_s29 + $0x18] sm:$0xff] %v518_v59 }
  0x5e   : > { %731 = vst [vmem:[%s1082_s29 + $0x58] sm:$0xff] %v532_v61 }
  0x5f PF: > { %s12_s15 = sadd.s32 1, %s895_s15   ;;  %s1166_s9 = smov %s875_s10 }
  0x60   : > { %p9_p1 = scmp.ge.s32.totalorder %s12_s15, 6   ;;  %s1167_s10 = smov %s978_s20 }
  0x61   : > { %s1168_s11 = smov %s887_s13  ;;  %s1169_s12 = smov %s891_s14 }
  0x62   : > { %s1170_s13 = smov %s1173_s16  ;;  %s1171_s14 = smov %s1177_s17 }
  0x63   :  { %11 = sbr.rel (!%p9_p1) target bundleno = 4 (0x4), region = 138 }

</bundles_post_ra>
